<compile_context>
chip_gen: v7x
topology: tpu7x:2x2x1
jax: 0.10.0
libtpu: 0.0.40
codegen_flags: <defaults>
</compile_context>

<pallas_src>
import jax
import jax.numpy as jnp
from jax.experimental import pallas as pl
from jax.experimental.pallas import tpu as pltpu

# ------------------------- model hyper-params (small) -------------------------
PATCH = 4          # vision patch size
D_IMG = 32         # image embedding dim
N_EXPERTS = 4      # MoE router experts
D_TXT = 32         # text embedding dim (== token embedding dim here)
VOCAB = 100        # synthetic vocab size
LANE = 128         # pad every output feature dim to the 128-lane vreg width
EPS = 1e-12        # L2-norm epsilon (PyTorch F.normalize-style clamp)


# ------------------------------ fused kernel ------------------------------
def _medmoe_fused_kernel(patches_ref, img_pool_ref, wp_ref, bp_ref, wr_ref, br_ref,
                         tok_ref, txt_pool_ref, wt_ref, bt_ref,
                         img_local_ref, img_glob_ref, logits_ref,
                         txt_local_ref, txt_glob_ref):
    # ---------------- image branch ----------------
    # [B*P, K] @ [K, 128] -> [B*P, 128]; columns >= D_IMG are zero-padded.
    local = jnp.dot(patches_ref[...], wp_ref[...],
                    preferred_element_type=jnp.float32) + bp_ref[...]
    img_local_ref[...] = local
    # Global mean pool as an MXU matmul against the [B, B*P] 1/P block-diagonal
    # pooling matrix (keeps the XLU free; no cross-sublane reduce).
    g = jnp.dot(img_pool_ref[...], local,
                preferred_element_type=jnp.float32)                      # [B, 128]
    img_glob_ref[...] = g
    # Router logits from the (pre-normalization) pooled image feature.
    logits_ref[...] = jnp.dot(g, wr_ref[...],
                              preferred_element_type=jnp.float32) + br_ref[...]

    # ---------------- text branch ----------------
    # [B*L, Din] @ [Din, 128] -> [B*L, 128]; columns >= D_TXT are zero-padded.
    h = jnp.dot(tok_ref[...], wt_ref[...],
                preferred_element_type=jnp.float32) + bt_ref[...]
    # Local word embeddings, L2-normalized over the embedding dim (lane axis).
    # Padded columns are zero, so the 128-wide norm equals the norm over D.
    txt_local_ref[...] = h * jax.lax.rsqrt(
        jnp.sum(h * h, axis=-1, keepdims=True) + EPS)
    # Masked mean (pool rows already carry mask / max(sum(mask), 1)), then L2.
    tg = jnp.dot(txt_pool_ref[...], h,
                 preferred_element_type=jnp.float32)                     # [B, 128]
    txt_glob_ref[...] = tg * jax.lax.rsqrt(
        jnp.sum(tg * tg, axis=-1, keepdims=True) + EPS)


def medmoe_fused(patches_flat, img_pool, wp_pad, bp_pad, wr_pad, br_pad,
                 tok_flat, txt_pool, wt_pad, bt_pad):
    BP = patches_flat.shape[0]
    BL = tok_flat.shape[0]
    B = img_pool.shape[0]
    return pl.pallas_call(
        _medmoe_fused_kernel,
        out_shape=(
            jax.ShapeDtypeStruct((BP, LANE), jnp.float32),   # img local (padded)
            jax.ShapeDtypeStruct((B, LANE), jnp.float32),    # img global (padded)
            jax.ShapeDtypeStruct((B, LANE), jnp.float32),    # router logits (padded)
            jax.ShapeDtypeStruct((BL, LANE), jnp.float32),   # text local (padded)
            jax.ShapeDtypeStruct((B, LANE), jnp.float32),    # text global (padded)
        ),
        # No grid / BlockSpecs: the whole (tiny) problem is a single invocation
        # with every operand resident in VMEM; outputs are lane-dense slabs.
        compiler_params=pltpu.CompilerParams(vmem_limit_bytes=32 * 1024 * 1024),
    )(patches_flat, img_pool, wp_pad, bp_pad, wr_pad, br_pad,
      tok_flat, txt_pool, wt_pad, bt_pad)


# ------------------------------ glue (plain JAX) ------------------------------
def patchify(images_nchw, patch):
    """NCHW -> [B, P, C*patch*patch] patch vectors."""
    B, C, H, W = images_nchw.shape
    x = jnp.transpose(images_nchw, (0, 2, 3, 1))                 # NHWC
    x = x.reshape(B, H // patch, patch, W // patch, patch, C)
    x = jnp.transpose(x, (0, 1, 3, 2, 4, 5))                     # B, hP, wP, ph, pw, C
    return x.reshape(B, (H // patch) * (W // patch), patch * patch * C)


def _pad_lane(x, lane=LANE):
    """Zero-pad the last dim to the 128-lane width."""
    return jnp.pad(x, ((0, 0), (0, lane - x.shape[-1])))


def init_params(key, in_ch):
    k = jax.random.split(key, 6)
    K = in_ch * PATCH * PATCH
    return {
        "wp": jax.random.normal(k[0], (K, D_IMG), jnp.float32) * 0.02,
        "bp": jnp.zeros((1, D_IMG), jnp.float32),
        "wr": jax.random.normal(k[1], (D_IMG, N_EXPERTS), jnp.float32) * 0.02,
        "br": jnp.zeros((1, N_EXPERTS), jnp.float32),
        "emb": jax.random.normal(k[2], (VOCAB, D_TXT), jnp.float32) * 0.02,
        "wt": jax.random.normal(k[3], (D_TXT, D_TXT), jnp.float32) * 0.02,
        "bt": jnp.zeros((1, D_TXT), jnp.float32),
    }


def med_moe_forward(params, batch):
    images = batch["image"]            # [B, C, H, W]  (NCHW, PyTorch layout)
    input_ids = batch["caption"]       # [B, L] int32 token ids
    attn_mask = batch["attention_mask"].astype(jnp.float32)

    B = images.shape[0]
    L = input_ids.shape[1]

    # ---- glue: embedding gather, patchify, pooling matrices, weight padding ----
    tok_emb = jnp.take(params["emb"], input_ids, axis=0)          # [B, L, Din]
    tok_flat = tok_emb.reshape(B * L, -1)                         # [B*L, Din]

    patches = patchify(images, PATCH)                             # [B, P, K]
    P = patches.shape[1]
    patches_flat = patches.reshape(B * P, -1)                     # [B*P, K]

    # img_pool[b, b*P + p] = 1/P  -> mean over patches as one MXU matmul
    img_pool = jnp.kron(jnp.eye(B, dtype=jnp.float32),
                        jnp.ones((1, P), jnp.float32)) / float(P)  # [B, B*P]
    # txt_pool[b, b*L + l] = mask[b, l] / max(sum(mask[b]), 1)
    msum = jnp.maximum(jnp.sum(attn_mask, axis=1, keepdims=True), 1.0)
    mnorm = attn_mask / msum
    txt_pool = jnp.einsum("bc,bl->bcl",
                          jnp.eye(B, dtype=jnp.float32), mnorm).reshape(B, B * L)

    # Lane-dense padded weights (zero padding keeps the math exact).
    wp_pad = _pad_lane(params["wp"])
    bp_pad = _pad_lane(params["bp"])
    wt_pad = _pad_lane(params["wt"])
    bt_pad = _pad_lane(params["bt"])
    wr_pad = jnp.pad(params["wr"],
                     ((0, LANE - params["wr"].shape[0]),
                      (0, LANE - params["wr"].shape[1])))
    br_pad = _pad_lane(params["br"])

    (img_local_p, img_glob_p, logits_p,
     txt_local_p, txt_glob_p) = medmoe_fused(
        patches_flat, img_pool, wp_pad, bp_pad, wr_pad, br_pad,
        tok_flat, txt_pool, wt_pad, bt_pad)

    # ---- layout plumbing (plain XLA): strip lane padding, restore module shapes
    img_emb_l = img_local_p[:, :D_IMG].reshape(B, P, D_IMG)
    img_emb_g = img_glob_p[:, :D_IMG]
    router_logits = logits_p[:, :N_EXPERTS]
    text_emb_l = txt_local_p[:, :D_TXT].reshape(B, L, D_TXT).transpose(0, 2, 1)
    text_emb_g = txt_glob_p[:, :D_TXT]

    # TODO(synk): tokenizer / string "sents" has no Pallas equivalent; return token ids.
    sents = input_ids

    return img_emb_g, img_emb_l, text_emb_g, text_emb_l, sents, router_logits


# ------------------------------ pure-JAX reference ------------------------------
def _reference(params, batch):
    images = batch["image"]
    ids = batch["caption"]
    mask = batch["attention_mask"].astype(jnp.float32)
    # text
    tok = jnp.take(params["emb"], ids, axis=0)                    # [B, L, Din]
    h = tok @ params["wt"] + params["bt"]                         # [B, L, D]
    tl = h * jax.lax.rsqrt(jnp.sum(h * h, axis=-1, keepdims=True) + EPS)
    tl = jnp.transpose(tl, (0, 2, 1))                             # [B, D, L]
    msum = jnp.maximum(jnp.sum(mask, axis=1, keepdims=True), 1.0)
    tg = jnp.einsum("bl,bld->bd", mask / msum, h)
    tg = tg * jax.lax.rsqrt(jnp.sum(tg * tg, axis=-1, keepdims=True) + EPS)
    # image
    p = patchify(images, PATCH)
    il = p @ params["wp"] + params["bp"]                          # [B, P, D]
    ig = jnp.mean(il, axis=1)                                     # [B, D]
    lg = ig @ params["wr"] + params["br"]                         # [B, E]
    return ig, il, tg, tl, lg


# ------------------------------------ main ------------------------------------
if __name__ == "__main__":
    key = jax.random.PRNGKey(0)
    k_img, k_tok, k_par = jax.random.split(key, 3)

    B, C, H, W = 2, 3, 16, 16
    L = 8

    images = jax.random.normal(k_img, (B, C, H, W), jnp.float32)
    input_ids = jax.random.randint(k_tok, (B, L), 0, VOCAB, jnp.int32)
    attn_mask = jnp.ones((B, L), jnp.float32)

    params = init_params(k_par, C)
    batch = {"image": images, "caption": input_ids, "attention_mask": attn_mask}

    outs = jax.block_until_ready(med_moe_forward(params, batch))
    img_emb_g, img_emb_l, text_emb_g, text_emb_l, sents, router_logits = outs

    P = (H // PATCH) * (W // PATCH)
    assert img_emb_g.shape == (B, D_IMG)
    assert img_emb_l.shape == (B, P, D_IMG)
    assert text_emb_g.shape == (B, D_TXT)
    assert text_emb_l.shape == (B, D_TXT, L)
    assert sents.shape == (B, L)
    assert router_logits.shape == (B, N_EXPERTS)

    # numerical check against a pure-JAX reference
    r_ig, r_il, r_tg, r_tl, r_lg = jax.block_until_ready(_reference(params, batch))
    assert jnp.allclose(img_emb_g, r_ig, atol=1e-4, rtol=1e-4)
    assert jnp.allclose(img_emb_l, r_il, atol=1e-4, rtol=1e-4)
    assert jnp.allclose(text_emb_g, r_tg, atol=1e-4, rtol=1e-4)
    assert jnp.allclose(text_emb_l, r_tl, atol=1e-4, rtol=1e-4)
    assert jnp.allclose(router_logits, r_lg, atol=1e-4, rtol=1e-4)

    print("KERNEL_OK")
</pallas_src>

<mosaic_0001>
module attributes {stable_mosaic.version = 11 : i64} {
  func.func @_medmoe_fused_kernel(%arg0: memref<32x48xf32, #tpu.memory_space<vmem>>, %arg1: memref<2x32xf32, #tpu.memory_space<vmem>>, %arg2: memref<48x128xf32, #tpu.memory_space<vmem>>, %arg3: memref<1x128xf32, #tpu.memory_space<vmem>>, %arg4: memref<128x128xf32, #tpu.memory_space<vmem>>, %arg5: memref<1x128xf32, #tpu.memory_space<vmem>>, %arg6: memref<16x32xf32, #tpu.memory_space<vmem>>, %arg7: memref<2x16xf32, #tpu.memory_space<vmem>>, %arg8: memref<32x128xf32, #tpu.memory_space<vmem>>, %arg9: memref<1x128xf32, #tpu.memory_space<vmem>>, %arg10: memref<32x128xf32, #tpu.memory_space<vmem>>, %arg11: memref<2x128xf32, #tpu.memory_space<vmem>>, %arg12: memref<2x128xf32, #tpu.memory_space<vmem>>, %arg13: memref<16x128xf32, #tpu.memory_space<vmem>>, %arg14: memref<2x128xf32, #tpu.memory_space<vmem>>) attributes {dimension_semantics = [], scalar_prefetch = 0 : i64, scratch_operands = 0 : i64, tpu.core_type = #tpu.core_type<tc>} {
    %c0 = arith.constant 0 : index
    %c0_0 = arith.constant 0 : index
    %0 = vector.load %arg0[%c0, %c0_0] : memref<32x48xf32, #tpu.memory_space<vmem>>, vector<32x48xf32>
    %c0_1 = arith.constant 0 : index
    %c0_2 = arith.constant 0 : index
    %1 = vector.load %arg2[%c0_1, %c0_2] : memref<48x128xf32, #tpu.memory_space<vmem>>, vector<48x128xf32>
    %cst = arith.constant dense<0.000000e+00> : vector<32x128xf32>
    %2 = tpu.matmul %0, %1, %cst {dimension_numbers = #tpu.dot_dimension_numbers<[1], [0], [0], [1], [0, 0, 1, 1], [], []>} : vector<32x48xf32>, vector<48x128xf32>, vector<32x128xf32> -> vector<32x128xf32>
    %c0_3 = arith.constant 0 : index
    %c0_4 = arith.constant 0 : index
    %3 = vector.load %arg3[%c0_3, %c0_4] : memref<1x128xf32, #tpu.memory_space<vmem>>, vector<1x128xf32>
    %4 = vector.broadcast %3 : vector<1x128xf32> to vector<32x128xf32>
    %5 = arith.addf %2, %4 : vector<32x128xf32>
    %c0_5 = arith.constant 0 : index
    %c0_6 = arith.constant 0 : index
    %6 = vector.load %arg10[%c0_5, %c0_6] : memref<32x128xf32, #tpu.memory_space<vmem>>, vector<32x128xf32>
    tpu.vector_store %arg10[%c0_5, %c0_6], %5 {strides = array<i32>} : memref<32x128xf32, #tpu.memory_space<vmem>>, vector<32x128xf32>,
    %c0_7 = arith.constant 0 : index
    %c0_8 = arith.constant 0 : index
    %7 = vector.load %arg1[%c0_7, %c0_8] : memref<2x32xf32, #tpu.memory_space<vmem>>, vector<2x32xf32>
    %cst_9 = arith.constant dense<0.000000e+00> : vector<2x128xf32>
    %8 = tpu.matmul %7, %5, %cst_9 {dimension_numbers = #tpu.dot_dimension_numbers<[1], [0], [0], [1], [0, 0, 1, 1], [], []>} : vector<2x32xf32>, vector<32x128xf32>, vector<2x128xf32> -> vector<2x128xf32>
    %c0_10 = arith.constant 0 : index
    %c0_11 = arith.constant 0 : index
    %9 = vector.load %arg11[%c0_10, %c0_11] : memref<2x128xf32, #tpu.memory_space<vmem>>, vector<2x128xf32>
    tpu.vector_store %arg11[%c0_10, %c0_11], %8 {strides = array<i32>} : memref<2x128xf32, #tpu.memory_space<vmem>>, vector<2x128xf32>,
    %c0_12 = arith.constant 0 : index
    %c0_13 = arith.constant 0 : index
    %10 = vector.load %arg4[%c0_12, %c0_13] : memref<128x128xf32, #tpu.memory_space<vmem>>, vector<128x128xf32>
    %cst_14 = arith.constant dense<0.000000e+00> : vector<2x128xf32>
    %11 = tpu.matmul %8, %10, %cst_14 {dimension_numbers = #tpu.dot_dimension_numbers<[1], [0], [0], [1], [0, 0, 1, 1], [], []>} : vector<2x128xf32>, vector<128x128xf32>, vector<2x128xf32> -> vector<2x128xf32>
    %c0_15 = arith.constant 0 : index
    %c0_16 = arith.constant 0 : index
    %12 = vector.load %arg5[%c0_15, %c0_16] : memref<1x128xf32, #tpu.memory_space<vmem>>, vector<1x128xf32>
    %13 = vector.broadcast %12 : vector<1x128xf32> to vector<2x128xf32>
    %14 = arith.addf %11, %13 : vector<2x128xf32>
    %c0_17 = arith.constant 0 : index
    %c0_18 = arith.constant 0 : index
    %15 = vector.load %arg12[%c0_17, %c0_18] : memref<2x128xf32, #tpu.memory_space<vmem>>, vector<2x128xf32>
    tpu.vector_store %arg12[%c0_17, %c0_18], %14 {strides = array<i32>} : memref<2x128xf32, #tpu.memory_space<vmem>>, vector<2x128xf32>,
    %c0_19 = arith.constant 0 : index
    %c0_20 = arith.constant 0 : index
    %16 = vector.load %arg6[%c0_19, %c0_20] : memref<16x32xf32, #tpu.memory_space<vmem>>, vector<16x32xf32>
    %c0_21 = arith.constant 0 : index
    %c0_22 = arith.constant 0 : index
    %17 = vector.load %arg8[%c0_21, %c0_22] : memref<32x128xf32, #tpu.memory_space<vmem>>, vector<32x128xf32>
    %cst_23 = arith.constant dense<0.000000e+00> : vector<16x128xf32>
    %18 = tpu.matmul %16, %17, %cst_23 {dimension_numbers = #tpu.dot_dimension_numbers<[1], [0], [0], [1], [0, 0, 1, 1], [], []>} : vector<16x32xf32>, vector<32x128xf32>, vector<16x128xf32> -> vector<16x128xf32>
    %c0_24 = arith.constant 0 : index
    %c0_25 = arith.constant 0 : index
    %19 = vector.load %arg9[%c0_24, %c0_25] : memref<1x128xf32, #tpu.memory_space<vmem>>, vector<1x128xf32>
    %20 = vector.broadcast %19 : vector<1x128xf32> to vector<16x128xf32>
    %21 = arith.addf %18, %20 : vector<16x128xf32>
    %22 = arith.mulf %21, %21 : vector<16x128xf32>
    %cst_26 = arith.constant dense<0.000000e+00> : vector<16xf32>
    %23 = vector.multi_reduction <add>, %22, %cst_26 [1] : vector<16x128xf32> to vector<16xf32>
    %24 = vector.shape_cast %23 : vector<16xf32> to vector<16x1xf32>
    %cst_27 = arith.constant 9.99999996E-13 : f32
    %25 = vector.broadcast %cst_27 : f32 to vector<16x1xf32>
    %26 = arith.addf %24, %25 : vector<16x1xf32>
    %27 = math.rsqrt %26 : vector<16x1xf32>
    %28 = vector.broadcast %27 : vector<16x1xf32> to vector<16x128xf32>
    %29 = arith.mulf %21, %28 : vector<16x128xf32>
    %c0_28 = arith.constant 0 : index
    %c0_29 = arith.constant 0 : index
    %30 = vector.load %arg13[%c0_28, %c0_29] : memref<16x128xf32, #tpu.memory_space<vmem>>, vector<16x128xf32>
    tpu.vector_store %arg13[%c0_28, %c0_29], %29 {strides = array<i32>} : memref<16x128xf32, #tpu.memory_space<vmem>>, vector<16x128xf32>,
    %c0_30 = arith.constant 0 : index
    %c0_31 = arith.constant 0 : index
    %31 = vector.load %arg7[%c0_30, %c0_31] : memref<2x16xf32, #tpu.memory_space<vmem>>, vector<2x16xf32>
    %cst_32 = arith.constant dense<0.000000e+00> : vector<2x128xf32>
    %32 = tpu.matmul %31, %21, %cst_32 {dimension_numbers = #tpu.dot_dimension_numbers<[1], [0], [0], [1], [0, 0, 1, 1], [], []>} : vector<2x16xf32>, vector<16x128xf32>, vector<2x128xf32> -> vector<2x128xf32>
    %33 = arith.mulf %32, %32 : vector<2x128xf32>
    %cst_33 = arith.constant dense<0.000000e+00> : vector<2xf32>
    %34 = vector.multi_reduction <add>, %33, %cst_33 [1] : vector<2x128xf32> to vector<2xf32>
    %35 = vector.shape_cast %34 : vector<2xf32> to vector<2x1xf32>
    %cst_34 = arith.constant 9.99999996E-13 : f32
    %36 = vector.broadcast %cst_34 : f32 to vector<2x1xf32>
    %37 = arith.addf %35, %36 : vector<2x1xf32>
    %38 = math.rsqrt %37 : vector<2x1xf32>
    %39 = vector.broadcast %38 : vector<2x1xf32> to vector<2x128xf32>
    %40 = arith.mulf %32, %39 : vector<2x128xf32>
    %c0_35 = arith.constant 0 : index
    %c0_36 = arith.constant 0 : index
    %41 = vector.load %arg14[%c0_35, %c0_36] : memref<2x128xf32, #tpu.memory_space<vmem>>, vector<2x128xf32>
    tpu.vector_store %arg14[%c0_35, %c0_36], %40 {strides = array<i32>} : memref<2x128xf32, #tpu.memory_space<vmem>>, vector<2x128xf32>,
    return
  }
}

</mosaic_0001>

<bundles_post_ra>
// kernel: tpu_custom_call.1
= control target key start
LH: loop header
LB: loop body
LE: loop exit
PB: predicated region body
PF: predicated region fallthrough
CT: control target
= control target key end

     0   :  { %20 = vsyncpa [#allocation3], 0  ;;  %s1354_s0 = inlined_call_operand.hbm [shape: f32[32,48], index: 0, kind: input, shape index: {}]   ;;  %s1355_s1 = inlined_call_operand.vmem [shape: f32[2,32], index: 1, kind: input, shape index: {}]   ;;  %s1356_s2 = inlined_call_operand.hbm [shape: f32[48,128], index: 2, kind: input, shape index: {}]   ;;  %s1357_s3 = inlined_call_operand.vmem [shape: f32[1,128], index: 3, kind: input, shape index: {}]   ;;  %s1358_s4 = inlined_call_operand.hbm [shape: f32[128,128], index: 4, kind: input, shape index: {}]   ;;  %s1359_s5 = inlined_call_operand.vmem [shape: f32[1,128], index: 5, kind: input, shape index: {}]   ;;  %s1360_s6 = inlined_call_operand.vmem [shape: f32[16,32], index: 6, kind: input, shape index: {}]   ;;  %s1361_s7 = inlined_call_operand.vmem [shape: f32[2,16], index: 7, kind: input, shape index: {}]   ;;  %s1362_s8 = inlined_call_operand.hbm [shape: f32[32,128], index: 8, kind: input, shape index: {}]   ;;  %s1363_s9 = inlined_call_operand.vmem [shape: f32[1,128], index: 9, kind: input, shape index: {}]   ;;  %s1364_s10 = inlined_call_operand.hbm [shape: f32[32,128], index: 10, kind: output, shape index: {0}]   ;;  %s1365_s11 = inlined_call_operand.hbm [shape: f32[2,128], index: 11, kind: output, shape index: {1}]   ;;  %s1366_s12 = inlined_call_operand.hbm [shape: f32[2,128], index: 12, kind: output, shape index: {2}]   ;;  %s1367_s13 = inlined_call_operand.hbm [shape: f32[16,128], index: 13, kind: output, shape index: {3}]   ;;  %s1368_s14 = inlined_call_operand.hbm [shape: f32[2,128], index: 14, kind: output, shape index: {4}]  }
   0x1   :  { %21 = vsyncpa [#allocation6], 0 }
   0x2   :  { %22 = vsyncpa [#allocation9], 0 }
   0x3   :  { %23 = vsyncpa [#allocation4], 0 }
   0x4   :  { %24 = vsyncpa [#allocation12], 0 }
   0x5   :  { %25 = vsyncpa [#allocation15], 0  ;;  %s1071_s29 = smov [#allocation5]   ;;  %s1072_s15 = smov [#allocation2]  }
   0x6   :  { %s45_s30 = sshll.u32 %s1071_s29, 4  ;;  %s31_s16 = sshll.u32 %s1072_s15, 4  ;;  %s46_s30 = int_to_ptr.vmem [resolvable:$true] %s45_s30  ;;  %s1160_s16 = int_to_ptr.vmem [resolvable:$true] %s31_s16 }
   0x7   :  { %s861_s19 = scalar_lea.hbm %s1356_s2, 768 }
   0x8   :  { %p862_p0 = scmp.ne.s32.totalorder %s1356_s2, %s861_s19  ;;  %p865_p1 = scmp.lt.u32.totalorder %s861_s19, %s1356_s2 }
   0xa   :  { %p867_p2 = pnand %p865_p1, %p862_p0 }
   0xc   :  { %870 = shalt.err (!%p867_p2)
}
   0xd   :  { %s871_s24 = scalar_lea.vmem %s46_s30, 768  ;;  %p876_p4 = scmp.lt.s32.totalorder %s46_s30, %s46_s30 }
   0xe   :  { %p872_p3 = scmp.ne.s32.totalorder %s46_s30, %s871_s24  ;;  %p877_p5 = scmp.lt.s32.totalorder %s871_s24, %s871_s24 }
  0x10   :  { %p878_p6 = por %p877_p5, %p876_p4 }
  0x12   :  { %p879_p7 = pnand %p878_p6, %p872_p3 }
  0x14   :  { %882 = shalt.err (!%p879_p7)
}
  0x15   :  { %s1073_s25 = smov 128   ;;  %s1074_s26 = smov 8  }
  0x16   :  { %51 = dma.hbm_to_vmem [thread:$0]  %s1356_s2, 768, %s46_s30, [#allocation6], %s1073_s25, %s1073_s25, %s1074_s26  }
  0x17   :  { %s883_s17 = scalar_lea.hbm %s1354_s0, 512 }
  0x18   :  { %p884_p8 = scmp.ne.s32.totalorder %s1354_s0, %s883_s17  ;;  %p887_p9 = scmp.lt.u32.totalorder %s883_s17, %s1354_s0 }
  0x1a   :  { %p889_p10 = pnand %p887_p9, %p884_p8 }
  0x1c   :  { %892 = shalt.err (!%p889_p10)
}
  0x1d   :  { %s893_s22 = scalar_lea.vmem %s1160_s16, 512  ;;  %p898_p12 = scmp.lt.s32.totalorder %s1160_s16, %s1160_s16 }
  0x1e   :  { %p894_p11 = scmp.ne.s32.totalorder %s1160_s16, %s893_s22  ;;  %p899_p13 = scmp.lt.s32.totalorder %s893_s22, %s893_s22 }
  0x20   :  { %p900_p0 = por %p899_p13, %p898_p12 }
  0x22   :  { %p901_p1 = pnand %p900_p0, %p894_p11 }
  0x24   :  { %904 = shalt.err (!%p901_p1)
}
  0x25   :  { %37 = dma.hbm_to_vmem [thread:$0]  %s1354_s0, 512, %s1160_s16, [#allocation3], %s1073_s25, %s1073_s25, %s1074_s26  }
  0x26   :  { %s1075_s23 = smov [#allocation7]   ;;  %s1076_s27 = smov [#allocation8]  }
  0x27   :  { %s59_s24 = sshll.u32 %s1075_s23, 4  ;;  %s77_s28 = sshll.u32 %s1076_s27, 4  ;;  %s60_s24 = int_to_ptr.vmem [resolvable:$true] %s59_s24  ;;  %s1197_s28 = int_to_ptr.vmem [resolvable:$true] %s77_s28 }
  0x28   :  { %s905_s17 = scalar_lea.hbm %s1358_s4, 2048 }
  0x29   :  { %p906_p2 = scmp.ne.s32.totalorder %s1358_s4, %s905_s17  ;;  %p909_p3 = scmp.lt.u32.totalorder %s905_s17, %s1358_s4 }
  0x2b   :  { %p911_p4 = pnand %p909_p3, %p906_p2 }
  0x2d   :  { %914 = shalt.err (!%p911_p4)
}
  0x2e   :  { %s915_s0 = scalar_lea.vmem %s60_s24, 2048  ;;  %p920_p6 = scmp.lt.s32.totalorder %s60_s24, %s60_s24 }
  0x2f   :  { %p916_p5 = scmp.ne.s32.totalorder %s60_s24, %s915_s0  ;;  %p921_p7 = scmp.lt.s32.totalorder %s915_s0, %s915_s0 }
  0x31   :  { %p922_p8 = por %p921_p7, %p920_p6 }
  0x33   :  { %p923_p9 = pnand %p922_p8, %p916_p5 }
  0x35   :  { %926 = shalt.err (!%p923_p9)
}
  0x36   :  { %65 = dma.hbm_to_vmem [thread:$0]  %s1358_s4, 2048, %s60_s24, [#allocation6], %s1073_s25, %s1073_s25, %s1074_s26  }
  0x37   :  { %s927_s23 = scalar_lea.hbm %s1362_s8, 512 }
  0x38   :  { %p928_p10 = scmp.ne.s32.totalorder %s1362_s8, %s927_s23  ;;  %p931_p11 = scmp.lt.u32.totalorder %s927_s23, %s1362_s8 }
  0x3a   :  { %p933_p12 = pnand %p931_p11, %p928_p10 }
  0x3c   :  { %936 = shalt.err (!%p933_p12)
}
  0x3d   :  { %s937_s18 = scalar_lea.vmem %s1197_s28, 512  ;;  %p942_p0 = scmp.lt.s32.totalorder %s1197_s28, %s1197_s28 }
  0x3e   :  { %p938_p13 = scmp.ne.s32.totalorder %s1197_s28, %s937_s18  ;;  %p943_p1 = scmp.lt.s32.totalorder %s937_s18, %s937_s18 }
  0x40   :  { %p944_p2 = por %p943_p1, %p942_p0 }
  0x42   :  { %p945_p3 = pnand %p944_p2, %p938_p13 }
  0x44   :  { %948 = shalt.err (!%p945_p3)
}
  0x45   :  { %83 = dma.hbm_to_vmem [thread:$0]  %s1362_s8, 512, %s1197_s28, [#allocation9], %s1073_s25, %s1073_s25, %s1074_s26  }
  0x46   :  { %1059 = dma.done.wait [#allocation3], 512  }
  0x47   :  { %1060 = vsyncadd [#allocation3], 4294966784 }
  0x48   :  { %1061 = dma.done.wait [#allocation6], 2816  }
  0x49   :  { %1062 = vsyncadd [#allocation6], 4294964480 }
  0x4a   :  { %1063 = dma.done.wait [#allocation9], 512  }
  0x4b   :  { %1064 = vsyncadd [#allocation9], 4294966784  ;;  %v102_v0 = vld [vmem:[#allocation5] sm:$0xff]  ;;  %v103_v1 = vld [vmem:[#allocation5 + $0x8] sm:$0xff]  ;;  %vm115_vm0 = vcmask 392192   ;;  %v1077_v13 = vmov 0.0|0.0  }
  0x4c   :  { %v104_v2 = vld [vmem:[#allocation5 + $0x10] sm:$0xff]  ;;  %v788_v3 = vpack.c.bf16 %v103_v1, %v102_v0  ;;  %v105_v4 = vld [vmem:[#allocation5 + $0x18] sm:$0xff]  ;;  %v106_v6 = vld [vmem:[#allocation5 + $0x20] sm:$0xff]  ;;  %806 = vmatprep.subr.bf16.mxu1 %v1077_v13  ;;  %vm1078_vm1 = vmmov 0   ;;  %v1079_v14 = vmov 0.0   ;;  %vm218_vm2 = vcmask 261120  }
  0x4d   :  { %v792_v5 = vpack.c.bf16 %v105_v4, %v104_v2  ;;  %v107_v7 = vld [vmem:[#allocation5 + $0x28] sm:$0xff]  ;;  %v98_v8 = vld [vmem:[#allocation2] sm:$0xff]  ;;  %v100_v11 = vld [vmem:[#allocation2 + $0x10] sm:$0xff]  ;;  %767 = vmatprep.mubr.msk.f32.mxu1 %vm1078_vm1, %v1079_v14  ;;  %vm496_vm3 = vcmask 130048   ;;  %vm571_vm4 = vcmask 1041408   ;;  %s1081_s27 = smov [#allocation14]  }
  0x4e   :  { %789 = vmatprep.subr.bf16.mxu0 %v788_v3  ;;  %718 = vmatprep.mubr.msk.f32.mxu0 %vm115_vm0, %v98_v8  ;;  %v796_v9 = vpack.c.bf16 %v107_v7, %v106_v6  ;;  %v99_v10 = vld [vmem:[#allocation2 + $0x8] sm:$0xff]  ;;  %v101_v12 = vld [vmem:[#allocation2 + $0x18] sm:$0xff]  ;;  %v293_v15 = vld [vmem:[#allocation7] sm:$0xff]  ;;  %s616_s29 = sshll.u32 %s1081_s27, 4  ;;  %s1280_s29 = int_to_ptr.vmem [resolvable:$true] %s616_s29 }
  0x4f   :  { %791 = vmatpush3.bf16.msra.mxu0 %v788_v3  ;;  %v294_v16 = vld [vmem:[#allocation7 + $0x8] sm:$0xff]  ;;  %v295_v17 = vld [vmem:[#allocation7 + $0x10] sm:$0xff]  ;;  %v296_v19 = vld [vmem:[#allocation7 + $0x18] sm:$0xff] }
  0x50   :  { %793 = vmatprep.subr.bf16.mxu0 %v792_v5  ;;  %v807_v18 = vpack.c.bf16 %v294_v16, %v293_v15  ;;  %v810_v20 = vpack.c.bf16 %v296_v19, %v295_v17  ;;  %v297_v21 = vld [vmem:[#allocation7 + $0x20] sm:$0xff]  ;;  %v298_v22 = vld [vmem:[#allocation7 + $0x28] sm:$0xff]  ;;  %v299_v24 = vld [vmem:[#allocation7 + $0x30] sm:$0xff] }
  0x51   :  { %v813_v23 = vpack.c.bf16 %v298_v22, %v297_v21  ;;  %v300_v25 = vld [vmem:[#allocation7 + $0x38] sm:$0xff]  ;;  %v301_v27 = vld [vmem:[#allocation7 + $0x40] sm:$0xff]  ;;  %v302_v28 = vld [vmem:[#allocation7 + $0x48] sm:$0xff] }
  0x52   :  { %808 = vmatpush3.bf16.msra.mxu1 %v807_v18  ;;  %v816_v26 = vpack.c.bf16 %v300_v25, %v299_v24  ;;  %v819_v29 = vpack.c.bf16 %v302_v28, %v301_v27  ;;  %v303_v30 = vld [vmem:[#allocation7 + $0x50] sm:$0xff]  ;;  %v304_v31 = vld [vmem:[#allocation7 + $0x58] sm:$0xff]  ;;  %v305_v33 = vld [vmem:[#allocation7 + $0x60] sm:$0xff] }
  0x53   :  { %795 = vmatpush3.bf16.msra.mxu0 %v792_v5  ;;  %809 = vmatprep.subr.bf16.mxu1 %v1077_v13  ;;  %v822_v32 = vpack.c.bf16 %v304_v31, %v303_v30  ;;  %v306_v34 = vld [vmem:[#allocation7 + $0x68] sm:$0xff]  ;;  %v307_v36 = vld [vmem:[#allocation7 + $0x70] sm:$0xff]  ;;  %v308_v37 = vld [vmem:[#allocation7 + $0x78] sm:$0xff] }
  0x54   :  { %797 = vmatprep.subr.bf16.mxu0 %v796_v9  ;;  %v825_v35 = vpack.c.bf16 %v306_v34, %v305_v33  ;;  %v828_v38 = vpack.c.bf16 %v308_v37, %v307_v36  ;;  %v654_v39 = vld [vmem:[%s1357_s3] ss:$0 sm:$0xff]  ;;  %v389_v46 = vld [vmem:[#allocation8] sm:$0xff]  ;;  %v390_v47 = vld [vmem:[#allocation8 + $0x8] sm:$0xff] }
  0x55   :  { %v830_v51 = vpack.c.bf16 %v390_v47, %v389_v46  ;;  %v391_v53 = vld [vmem:[#allocation8 + $0x10] sm:$0xff]  ;;  %v392_v54 = vld [vmem:[#allocation8 + $0x18] sm:$0xff] }
  0x56   :  { %811 = vmatpush3.bf16.msra.mxu1 %v810_v20  ;;  %v217_v55 = vld [vmem:[%s1355_s1] sm:$0x3]  ;;  %v834_v56 = vpack.c.bf16 %v392_v54, %v391_v53  ;;  %v388_v58 = vld [vmem:[%s1360_s6 + $0x8] sm:$0xff] }
  0x57   :  { %799 = vmatpush3.bf16.msra.mxu0 %v796_v9  ;;  %812 = vmatprep.subr.bf16.mxu1 %v1077_v13  ;;  %v387_v57 = vld [vmem:[%s1360_s6] sm:$0xff] }
  0x58   :  { %800 = vmatprep.subr.bf16.mxu0 %v1077_v13  ;;  %v661_v61 = vld [vmem:[%s1363_s9] ss:$0 sm:$0xff] }
  0x59   :  { %v495_v4 = vld [vmem:[%s1361_s7] sm:$0x3]  ;;  %s1080_s7 = smov [#allocation11]  }
  0x5a   :  { %719 = vmatmul.mubr.msk.f32.vlgmr.msra.gmra.mrb[0].mxu0 %vm115_vm0, %v99_v10  ;;  %814 = vmatpush3.bf16.msra.mxu1 %v813_v23  ;;  %s597_s23 = sshll.u32 %s1080_s7, 4  ;;  %s598_s23 = int_to_ptr.vmem [resolvable:$true] %s597_s23 }
  0x5b   :  { %721 = vmatprep.mubr.msk.f32.mxu0 %vm115_vm0, %v100_v11  ;;  %815 = vmatprep.subr.bf16.mxu1 %v1077_v13  ;;  %p954_p5 = scmp.lt.s32.totalorder %s598_s23, %s598_s23 }
  0x5e   :  { %722 = vmatmul.mubr.msk.f32.gmra.mrb[2].mxu0 %vm115_vm0, %v101_v12  ;;  %817 = vmatpush3.bf16.msra.mxu1 %v816_v26 }
  0x5f   :  { %732 = vmatprep.mubr.msk.f32.mxu0 %vm1078_vm1, %v1079_v14  ;;  %818 = vmatprep.subr.bf16.mxu1 %v1077_v13 }
  0x62   :  { %820 = vmatpush3.bf16.msra.mxu1 %v819_v29 }
  0x63   :  { %821 = vmatprep.subr.bf16.mxu1 %v1077_v13 }
  0x66   :  { %823 = vmatpush3.bf16.msra.mxu1 %v822_v32 }
  0x67   :  { %824 = vmatprep.subr.bf16.mxu1 %v1077_v13 }
  0x6a   :  { %826 = vmatpush3.bf16.msra.mxu1 %v825_v35 }
  0x6b   :  { %827 = vmatprep.subr.bf16.mxu1 %v1077_v13 }
  0x6e   :  { %829 = vmatpush3.bf16.msra.mxu1 %v828_v38 }
 0x12d   :  { %v720_v40 = vpop.f32.mrb[0].mxu0 }
 0x12e   :  { %v200_v41 = vadd.f32 %v720_v40, %v654_v39  ;;  %v194_v42 = vpop.f32.mrb[1].mxu0 }
 0x12f   :  { %v195_v43 = vadd.f32 %v654_v39, %v194_v42 }
 0x130   :  { %214 = vst [vmem:[#allocation10 + $0x8] sm:$0xff] %v200_v41 }
 0x131   :  { %213 = vst [vmem:[#allocation10] sm:$0xff] %v195_v43  ;;  %v801_v44 = vpack.c.bf16 %v200_v41, %v195_v43  ;;  %v723_v45 = vpop.f32.mrb[2].mxu0 }
 0x132   :  { %v210_v48 = vadd.f32 %v723_v45, %v654_v39  ;;  %v204_v49 = vpop.f32.mrb[3].mxu0 }
 0x133   :  { %v205_v50 = vadd.f32 %v654_v39, %v204_v49  ;;  %802 = vmatpush3.bf16.msra.mxu0 %v801_v44 }
 0x134   :  { %216 = vst [vmem:[#allocation10 + $0x18] sm:$0xff] %v210_v48  ;;  %803 = vmatprep.subr.bf16.mxu0 %v1077_v13 }
 0x135   :  { %215 = vst [vmem:[#allocation10 + $0x10] sm:$0xff] %v205_v50  ;;  %v804_v52 = vpack.c.bf16 %v210_v48, %v205_v50 }
 0x137   :  { %805 = vmatpush3.bf16.msra.mxu0 %v804_v52 }
 0x138   :  { %831 = vmatprep.subr.bf16.mxu0 %v830_v51 }
 0x13a   :  { %733 = vmatmul.mubr.msk.f32.vlgmr.msra.gmra.mrb[4].mxu0 %vm218_vm2, %v217_v55 }
 0x13b   :  { %833 = vmatpush3.bf16.msra.mxu0 %v830_v51  ;;  %778 = vmatprep.mubr.msk.f32.mxu0 %vm218_vm2, %v387_v57 }
 0x13c   :  { %835 = vmatprep.subr.bf16.mxu0 %v834_v56 }
 0x13f   :  { %837 = vmatpush3.bf16.msra.mxu0 %v834_v56 }
 0x140   :  { %838 = vmatprep.subr.bf16.mxu0 %v1077_v13 }
 0x142   :  { %779 = vmatmul.mubr.msk.f32.vlgmr.msra.gmra.mrb[6].mxu0 %vm218_vm2, %v388_v58 }
 0x143   :  { %785 = vmatprep.mubr.msk.f32.mxu0 %vm1078_vm1, %v1079_v14  ;;  %v660_v14 = vld [vmem:[%s1359_s5] ss:$0 sm:$0xff]  ;;  %s949_s5 = scalar_lea.vmem %s598_s23, 32 }
 0x144   :  { %p950_p4 = scmp.ne.s32.totalorder %s598_s23, %s949_s5  ;;  %p955_p6 = scmp.lt.s32.totalorder %s949_s5, %s949_s5 }
 0x146   :  { %p956_p7 = por %p955_p6, %p954_p5 }
 0x148   :  { %p957_p8 = pnand %p956_p7, %p950_p4 }
 0x20d   :  { %v288_v59 = vpop.f32.mrb[4].mxu0 }
 0x20e   :  { %292 = vst [vmem:[#allocation11] sm:$0x3] %v288_v59  ;;  %v734_v60 = vpop.f32.mrb[5].mxu0  ;;  %768 = vmatmul.mubr.f32.vlgmr.msra.gmra.mrb[0].mxu1 %v288_v59 }
 0x215   :  { %v780_v62 = vpop.f32.mrb[6].mxu0 }
 0x216   :  { %v478_v63 = vadd.f32 %v780_v62, %v661_v61  ;;  %v472_v0 = vpop.f32.mrb[7].mxu0 }
 0x217   :  { %v473_v1 = vadd.f32 %v661_v61, %v472_v0 }
 0x218   :  { %v482_v5 = vmul.f32 %v478_v63, %v478_v63 }
 0x219   :  { %v839_v2 = vpack.c.bf16 %v478_v63, %v473_v1  ;;  %v481_v3 = vmul.f32 %v473_v1, %v473_v1 }
 0x21b   :  { %840 = vmatpush3.bf16.msra.mxu0 %v839_v2  ;;  %483 = vadd.xlane.f32.xlu0 %v481_v3 }
 0x21e   :  { %786 = vmatmul.mubr.msk.f32.vlgmr.msra.gmra.mrb[8].mxu0 %vm496_vm3, %v495_v4 }
 0x21f   :  { %485 = vadd.xlane.f32.xlu0 %v482_v5 }
 0x2a8   :  { %v484_v6 = vpop.xlane.xlu0 %483 }
 0x2a9   :  { %v487_v7 = vadd.f32 1e-12, %v484_v6 }
 0x2ab   :  { %855 = vrsqrt.f32 %v487_v7 }
 0x2ac   :  { %v486_v8 = vpop.xlane.xlu0 %485 }
 0x2ad   :  { %v488_v9 = vadd.f32 1e-12, %v486_v8 }
 0x2af   :  { %857 = vrsqrt.f32 %v488_v9 }
 0x2b5   :  { %v856_v10 = vpop.eup %855 }
 0x2b6   :  { %v491_v11 = vmul.f32 %v856_v10, %v473_v1 }
 0x2b8   :  { %493 = vst [vmem:[#allocation14] sm:$0xff] %v491_v11 }
 0x2b9   :  { %v858_v12 = vpop.eup %857 }
 0x2ba   :  { %v492_v13 = vmul.f32 %v858_v12, %v478_v63 }
 0x2bc   :  { %494 = vst [vmem:[#allocation14 + $0x8] sm:$0xff] %v492_v13 }
 0x2e1   :  { %v382_v15 = vpop.f32.mrb[0].mxu1 }
 0x2e2   :  { %v383_v16 = vadd.f32 %v660_v14, %v382_v15  ;;  %v769_v17 = vpop.f32.mrb[1].mxu1 }
 0x2e4   :  { %386 = vst [vmem:[#allocation13] sm:$0x3] %v383_v16 }
 0x2f1   :  { %v1276_v18 = vpop.f32.mrb[8].mxu0 }
 0x2f2   :  { %v787_v19 = vpop.f32.mrb[9].mxu0  ;;  %v570_v20 = vmul.f32 %v1276_v18, %v1276_v18 }
 0x2f4   :  { %v572_v21 = vsel %vm571_vm4, %v570_v20, 0.0 }
 0x2f5   :  { %573 = vadd.xlane.f32.xlu1 %v572_v21 }
 0x2f6   :  { %960 = shalt.err (!%p957_p8)
}
 0x2f7   :  { %s961_s18 = scalar_lea.hbm %s1365_s11, 32 }
 0x2f8   :  { %p962_p9 = scmp.ne.s32.totalorder %s1365_s11, %s961_s18  ;;  %p965_p10 = scmp.lt.u32.totalorder %s961_s18, %s1365_s11 }
 0x2fa   :  { %p967_p11 = pnand %p965_p10, %p962_p9 }
 0x2fc   :  { %970 = shalt.err (!%p967_p11)
}
 0x2fd   :  { %600 = dma.vmem_to_hbm [thread:$0]  %s598_s23, 32, %s1365_s11, [#allocation12]  }
 0x2fe   :  { %s971_s20 = scalar_lea.vmem %s1280_s29, 256  ;;  %p976_p13 = scmp.lt.s32.totalorder %s1280_s29, %s1280_s29 }
 0x2ff   :  { %p972_p12 = scmp.ne.s32.totalorder %s1280_s29, %s971_s20  ;;  %p977_p0 = scmp.lt.s32.totalorder %s971_s20, %s971_s20 }
 0x301   :  { %p978_p1 = por %p977_p0, %p976_p13 }
 0x303   :  { %p979_p2 = pnand %p978_p1, %p972_p12 }
 0x305   :  { %982 = shalt.err (!%p979_p2)
}
 0x306   :  { %s983_s16 = scalar_lea.hbm %s1367_s13, 256 }
 0x307   :  { %p984_p3 = scmp.ne.s32.totalorder %s1367_s13, %s983_s16  ;;  %p987_p4 = scmp.lt.u32.totalorder %s983_s16, %s1367_s13 }
 0x309   :  { %p989_p5 = pnand %p987_p4, %p984_p3 }
 0x30b   :  { %992 = shalt.err (!%p989_p5)
}
 0x30c   :  { %622 = dma.vmem_to_hbm [thread:$0]  %s1280_s29, 256, %s1367_s13, [#allocation15], %s1073_s25, %s1073_s25, %s1074_s26  }
 0x30d   :  { %s1082_s30 = smov [#allocation10]   ;;  %s1083_s23 = smov [#allocation13]  }
 0x30e   :  { %s584_s7 = sshll.u32 %s1082_s30, 4  ;;  %s607_s27 = sshll.u32 %s1083_s23, 4  ;;  %s585_s7 = int_to_ptr.vmem [resolvable:$true] %s584_s7  ;;  %s608_s27 = int_to_ptr.vmem [resolvable:$true] %s607_s27 }
 0x30f   :  { %s993_s5 = scalar_lea.vmem %s585_s7, 512  ;;  %p998_p7 = scmp.lt.s32.totalorder %s585_s7, %s585_s7 }
 0x310   :  { %p994_p6 = scmp.ne.s32.totalorder %s585_s7, %s993_s5  ;;  %p999_p8 = scmp.lt.s32.totalorder %s993_s5, %s993_s5 }
 0x312   :  { %p1000_p9 = por %p999_p8, %p998_p7 }
 0x314   :  { %p1001_p10 = pnand %p1000_p9, %p994_p6 }
 0x316   :  { %1004 = shalt.err (!%p1001_p10)
}
 0x317   :  { %s1005_s18 = scalar_lea.hbm %s1364_s10, 512 }
 0x318   :  { %p1006_p11 = scmp.ne.s32.totalorder %s1364_s10, %s1005_s18  ;;  %p1009_p12 = scmp.lt.u32.totalorder %s1005_s18, %s1364_s10 }
 0x31a   :  { %p1011_p13 = pnand %p1009_p12, %p1006_p11 }
 0x31c   :  { %1014 = shalt.err (!%p1011_p13)
}
 0x31d   :  { %590 = dma.vmem_to_hbm [thread:$0]  %s585_s7, 512, %s1364_s10, [#allocation4], %s1073_s25, %s1073_s25, %s1074_s26  }
 0x31e   :  { %s1015_s3 = scalar_lea.vmem %s608_s27, 32  ;;  %p1020_p1 = scmp.lt.s32.totalorder %s608_s27, %s608_s27 }
 0x31f   :  { %p1016_p0 = scmp.ne.s32.totalorder %s608_s27, %s1015_s3  ;;  %p1021_p2 = scmp.lt.s32.totalorder %s1015_s3, %s1015_s3 }
 0x321   :  { %p1022_p3 = por %p1021_p2, %p1020_p1 }
 0x323   :  { %p1023_p4 = pnand %p1022_p3, %p1016_p0 }
 0x325   :  { %1026 = shalt.err (!%p1023_p4)
}
 0x326   :  { %s1027_s21 = scalar_lea.hbm %s1366_s12, 32 }
 0x327   :  { %p1028_p5 = scmp.ne.s32.totalorder %s1366_s12, %s1027_s21  ;;  %p1031_p6 = scmp.lt.u32.totalorder %s1027_s21, %s1366_s12 }
 0x329   :  { %p1033_p7 = pnand %p1031_p6, %p1028_p5 }
 0x32b   :  { %1036 = shalt.err (!%p1033_p7)
}
 0x32c   :  { %610 = dma.vmem_to_hbm [thread:$0]  %s608_s27, 32, %s1366_s12, [#allocation12]  }
 0x32d   :  { %s1084_s26 = smov [#allocation16]  }
 0x32e   :  { %s629_s6 = sshll.u32 %s1084_s26, 4  ;;  %s630_s6 = int_to_ptr.vmem [resolvable:$true] %s629_s6 }
 0x32f   :  { %s1037_s2 = scalar_lea.vmem %s630_s6, 32  ;;  %p1042_p9 = scmp.lt.s32.totalorder %s630_s6, %s630_s6 }
 0x330   :  { %p1038_p8 = scmp.ne.s32.totalorder %s630_s6, %s1037_s2  ;;  %p1043_p10 = scmp.lt.s32.totalorder %s1037_s2, %s1037_s2 }
 0x332   :  { %p1044_p11 = por %p1043_p10, %p1042_p9 }
 0x334   :  { %p1045_p12 = pnand %p1044_p11, %p1038_p8 }
 0x382   :  { %v574_v22 = vpop.xlane.xlu1 %573 }
 0x383   :  { %v575_v23 = vadd.f32 1e-12, %v574_v22 }
 0x385   :  { %859 = vrsqrt.f32 %v575_v23 }
 0x38f   :  { %v860_v24 = vpop.eup %859 }
 0x390   :  { %v577_v25 = vmul.f32 %v860_v24, %v1276_v18 }
 0x392   :  { %578 = vst [vmem:[#allocation16] sm:$0x3] %v577_v25 }
 0x393   :  { %1048 = shalt.err (!%p1045_p12)
}
 0x394   :  { %s1049_s12 = scalar_lea.hbm %s1368_s14, 32 }
 0x395   :  { %p1050_p13 = scmp.ne.s32.totalorder %s1368_s14, %s1049_s12  ;;  %p1053_p0 = scmp.lt.u32.totalorder %s1049_s12, %s1368_s14 }
 0x397   :  { %p1055_p1 = pnand %p1053_p0, %p1050_p13 }
 0x399   :  { %1058 = shalt.err (!%p1055_p1)
}
 0x39a   :  { %632 = dma.vmem_to_hbm [thread:$0]  %s630_s6, 32, %s1368_s14, [#allocation15]  }
 0x39b   :  { %1065 = dma.done.wait [#allocation4], 512  }
 0x39c   :  { %1066 = vsyncadd [#allocation4], 4294966784 }
 0x39d   :  { %1067 = dma.done.wait [#allocation12], 64  }
 0x39e   :  { %1068 = vsyncadd [#allocation12], 4294967232 }
 0x39f   :  { %1069 = dma.done.wait [#allocation15], 288  }
 0x3a0   :  { %1070 = vsyncadd [#allocation15], 4294967008 }
 0x3a1   :  { %648 = vsyncpa [#allocation3], 1 }
 0x3a2   :  { %649 = vsyncpa [#allocation6], 1 }
 0x3a3   :  { %650 = vsyncpa [#allocation9], 1 }
 0x3a4   :  { %651 = vsyncpa [#allocation4], 1 }
 0x3a5   :  { %652 = vsyncpa [#allocation12], 1 }
 0x3a6   :  { %653 = vsyncpa [#allocation15], 1 }

</bundles_post_ra>
